<compile_context>
chip_gen: v7x
topology: tpu7x:2x2x1
jax: 0.10.0
libtpu: 0.0.40
codegen_flags: <defaults>
</compile_context>

<pallas_src>
import functools

import jax
import jax.numpy as jnp
from jax.experimental import pallas as pl
from jax.experimental.pallas import tpu as pltpu

_LANE = 128
_SUBLANE = 8
_VMEM_BUDGET_BYTES = 20 * 1024 * 1024   # per-step estimate target (all buffers)
_VMEM_LIMIT_BYTES = 40 * 1024 * 1024    # scoped VMEM limit; safe on v5e/v6e/v7x
_MIN_SPLIT_ROWS = 512                    # split a single block for megacore only
                                         # when there are >= 2*this rows of work


def _round_up(x, m):
    return ((x + m - 1) // m) * m


def _pick_block_rows(rows, bytes_per_row, *, align, max_rows=None):
    """Largest VMEM-safe block height (rows of the kernel-visible arrays)."""
    cap = _VMEM_BUDGET_BYTES // max(bytes_per_row, 1)
    if max_rows is not None:
        cap = min(cap, max_rows)
    cap = max(align, (cap // align) * align)
    if rows > cap:
        return cap                        # >= 2 blocks automatically
    if rows >= 2 * _MIN_SPLIT_ROWS:
        # Would fit in a single block: split in two so both v7x TCs issue DMA.
        return _round_up(pl.cdiv(rows, 2), align)
    return rows                           # single block == full (small) array


def _packed_kernel(u_ref, f_ref, p_ref, *, d, nw):
    """Lane-packed path.

    u_ref, f_ref : (TBP, 128) — each packed row holds 128//d original rows.
    p_ref        : (TBP, nw)  — column r (< 128//d) is mean(u*f) of original
                                row  i*(128//d) + r.
    """
    prod = u_ref[...].astype(jnp.float32) * f_ref[...].astype(jnp.float32)
    # Block-diagonal reducer: W[k, c] = 1/d iff lane k belongs to group c.
    lane = jax.lax.broadcasted_iota(jnp.int32, (_LANE, nw), 0)
    col = jax.lax.broadcasted_iota(jnp.int32, (_LANE, nw), 1)
    w = jnp.where(lane // d == col, jnp.float32(1.0 / d), jnp.float32(0.0))
    p_ref[...] = jnp.dot(prod, w, preferred_element_type=jnp.float32)


def _rowwise_kernel(u_ref, f_ref, p_ref, *, d):
    """Fallback path.

    u_ref, f_ref : (TB, D) embeddings (native dtype, upcast in-kernel).
    p_ref        : (1, TB) lane-dense per-row means.
    """
    prod = u_ref[...].astype(jnp.float32) * f_ref[...].astype(jnp.float32)
    p_ref[...] = (jnp.sum(prod, axis=1) * jnp.float32(1.0 / d))[None, :]


def _p_score_packed(user_embed, feature_embed, max_block_rows):
    B, D = user_embed.shape
    r = _LANE // D                         # original rows per packed row
    bp = B // r                            # packed row count (B % r == 0)
    nw = max(r, _SUBLANE)                  # pad matmul N; extra cols are zero
    itemsize = user_embed.dtype.itemsize
    # 2 input streams x 2 pipeline buffers x 128 lanes, plus the f32 output
    # block (lane-padded to 128 in VMEM) x 2 buffers.
    bytes_per_row = 2 * 2 * _LANE * itemsize + 2 * _LANE * 4
    max_rows = None if max_block_rows is None else max(1, max_block_rows // r)
    tbp = _pick_block_rows(bp, bytes_per_row, align=_LANE, max_rows=max_rows)

    u2 = user_embed.reshape(bp, _LANE)     # row-major contiguous repack
    f2 = feature_embed.reshape(bp, _LANE)

    out = pl.pallas_call(
        functools.partial(_packed_kernel, d=D, nw=nw),
        out_shape=jax.ShapeDtypeStruct((bp, nw), jnp.float32),
        grid=(pl.cdiv(bp, tbp),),
        in_specs=[pl.BlockSpec((tbp, _LANE), lambda i: (i, 0)),
                  pl.BlockSpec((tbp, _LANE), lambda i: (i, 0))],
        out_specs=pl.BlockSpec((tbp, nw), lambda i: (i, 0)),
        compiler_params=pltpu.CompilerParams(
            dimension_semantics=("parallel",),
            vmem_limit_bytes=_VMEM_LIMIT_BYTES),
    )(u2, f2)
    return out[:, :r].reshape(-1)          # (B,) in original row order


def _p_score_rowwise(user_embed, feature_embed, max_block_rows):
    B, D = user_embed.shape
    itemsize = user_embed.dtype.itemsize
    d_eff = _round_up(D, _LANE)            # minor dim is lane-padded in VMEM
    bytes_per_row = 2 * 2 * d_eff * itemsize + 2 * 4
    tb = _pick_block_rows(B, bytes_per_row, align=_LANE, max_rows=max_block_rows)

    out = pl.pallas_call(
        functools.partial(_rowwise_kernel, d=D),
        out_shape=jax.ShapeDtypeStruct((1, B), jnp.float32),
        grid=(pl.cdiv(B, tb),),
        in_specs=[pl.BlockSpec((tb, D), lambda i: (i, 0)),
                  pl.BlockSpec((tb, D), lambda i: (i, 0))],
        out_specs=pl.BlockSpec((1, tb), lambda i: (0, i)),
        compiler_params=pltpu.CompilerParams(
            dimension_semantics=("parallel",),
            vmem_limit_bytes=_VMEM_LIMIT_BYTES),
    )(user_embed, feature_embed)
    return out[0]


@functools.partial(jax.jit, static_argnames=("max_block_rows",))
def uf_att_forward(user_embed, feature_embed, score, *, max_block_rows=None):
    """user_embed/feature_embed: [B, D]; score: [B]. Returns (loss, p_score)."""
    B, D = user_embed.shape
    r = _LANE // D if (D < _LANE and _LANE % D == 0) else 1
    if r > 1 and B % r == 0 and B >= _SUBLANE * r:
        p_score = _p_score_packed(user_embed, feature_embed, max_block_rows)
    else:
        p_score = _p_score_rowwise(user_embed, feature_embed, max_block_rows)
    score = score.astype(jnp.float32)
    loss = jnp.sqrt(jnp.mean(jnp.square(p_score - score)) + 1e-6)
    return loss, p_score


def uf_att_reference(user_embed, feature_embed, score):
    p_score = jnp.mean(user_embed.astype(jnp.float32) *
                       feature_embed.astype(jnp.float32), axis=1)
    loss = jnp.sqrt(jnp.mean(jnp.square(p_score - score.astype(jnp.float32)))
                    + 1e-6)
    return loss, p_score


def _run_case(key, user_number, feature_number, embedding_dim, batch,
              max_block_rows=None):
    k_u, k_f, k_ui, k_fi, k_s = jax.random.split(key, 5)

    # nn.init.uniform_(weight, a=0.0, b=1.0)
    user_table = jax.random.uniform(k_u, (user_number, embedding_dim),
                                    dtype=jnp.float32, minval=0.0, maxval=1.0)
    feature_table = jax.random.uniform(k_f, (feature_number, embedding_dim),
                                       dtype=jnp.float32, minval=0.0, maxval=1.0)
    user_batch = jax.random.randint(k_ui, (batch,), 0, user_number, jnp.int32)
    feature_batch = jax.random.randint(k_fi, (batch,), 0, feature_number,
                                       jnp.int32)
    score_batch = jax.random.uniform(k_s, (batch,), dtype=jnp.float32)

    # Embedding lookup stays in XLA (see TODO(synk) at the top).
    user_embed = jnp.take(user_table, user_batch, axis=0)
    feature_embed = jnp.take(feature_table, feature_batch, axis=0)

    loss, p_score = uf_att_forward(user_embed, feature_embed, score_batch,
                                   max_block_rows=max_block_rows)
    loss = jax.block_until_ready(loss)
    p_score = jax.block_until_ready(p_score)

    ref_loss, ref_p = uf_att_reference(user_embed, feature_embed, score_batch)
    assert jnp.allclose(p_score, ref_p, atol=1e-5, rtol=1e-4)
    assert jnp.allclose(loss, ref_loss, atol=1e-5, rtol=1e-4), (loss, ref_loss)


if __name__ == "__main__":
    key = jax.random.PRNGKey(0)
    k1, k2, k3 = jax.random.split(key, 3)

    # 1) Tiny batch -> row-wise kernel, single equal-full block.
    _run_case(k1, user_number=10, feature_number=12, embedding_dim=32, batch=8)

    # 2) Ragged batch (257 not divisible by 128//32) -> row-wise kernel,
    #    3 blocks with a partial tail block and NO padded input copies.
    _run_case(k2, user_number=50, feature_number=40, embedding_dim=32,
              batch=257, max_block_rows=128)

    # 3) Lane-packed path ([B,32] -> [B/4,128]) with a forced 4-step grid.
    _run_case(k3, user_number=300, feature_number=200, embedding_dim=32,
              batch=2048, max_block_rows=512)

    print("KERNEL_OK")
</pallas_src>

<mosaic_0001>
module attributes {stable_mosaic.version = 11 : i64} {
  func.func @_rowwise_kernel(%arg0: i32, %arg1: memref<8x32xf32, #tpu.memory_space<vmem>>, %arg2: memref<8x32xf32, #tpu.memory_space<vmem>>, %arg3: memref<1x8xf32, #tpu.memory_space<vmem>>) attributes {dimension_semantics = [#tpu.dimension_semantics<parallel>], iteration_bounds = array<i64: 1>, scalar_prefetch = 0 : i64, scratch_operands = 0 : i64, tpu.core_type = #tpu.core_type<tc>, window_params = [{transform_indices = @transform_0, window_bounds = array<i64: 8, 32>}, {transform_indices = @transform_1, window_bounds = array<i64: 8, 32>}, {transform_indices = @transform_2, window_bounds = array<i64: 1, 8>}]} {
    %c0 = arith.constant 0 : index
    %c0_0 = arith.constant 0 : index
    %0 = vector.load %arg1[%c0, %c0_0] : memref<8x32xf32, #tpu.memory_space<vmem>>, vector<8x32xf32>
    %c0_1 = arith.constant 0 : index
    %c0_2 = arith.constant 0 : index
    %1 = vector.load %arg2[%c0_1, %c0_2] : memref<8x32xf32, #tpu.memory_space<vmem>>, vector<8x32xf32>
    %2 = arith.mulf %0, %1 : vector<8x32xf32>
    %cst = arith.constant dense<0.000000e+00> : vector<8xf32>
    %3 = vector.multi_reduction <add>, %2, %cst [1] : vector<8x32xf32> to vector<8xf32>
    %cst_3 = arith.constant 3.125000e-02 : f32
    %4 = vector.broadcast %cst_3 : f32 to vector<8xf32>
    %5 = arith.mulf %3, %4 : vector<8xf32>
    %6 = vector.shape_cast %5 : vector<8xf32> to vector<1x8xf32>
    %c0_4 = arith.constant 0 : index
    %c0_5 = arith.constant 0 : index
    %7 = vector.load %arg3[%c0_4, %c0_5] : memref<1x8xf32, #tpu.memory_space<vmem>>, vector<1x8xf32>
    tpu.vector_store %arg3[%c0_4, %c0_5], %6 {strides = array<i32>} : memref<1x8xf32, #tpu.memory_space<vmem>>, vector<1x8xf32>,
    return
  }
  func.func @transform_0(%arg0: i32) -> (i32, i32) {
    %c0_i32 = arith.constant 0 : i32
    %c0_i32_0 = arith.constant 0 : i32
    return %arg0, %c0_i32 : i32, i32
  }
  func.func @transform_1(%arg0: i32) -> (i32, i32) {
    %c0_i32 = arith.constant 0 : i32
    %c0_i32_0 = arith.constant 0 : i32
    return %arg0, %c0_i32 : i32, i32
  }
  func.func @transform_2(%arg0: i32) -> (i32, i32) {
    %c0_i32 = arith.constant 0 : i32
    %c0_i32_0 = arith.constant 0 : i32
    return %c0_i32, %arg0 : i32, i32
  }
}

</mosaic_0001>

<bundles_post_ra>
// kernel: uf_att_forward.1
= control target key start
LH: loop header
LB: loop body
LE: loop exit
PB: predicated region body
PF: predicated region fallthrough
CT: control target
= control target key end

     0   :  { %7 = vsyncpa [#allocation3], 0  ;;  %s153_s0 = inlined_call_operand.hbm [shape: f32[8,32], index: 0, kind: input, shape index: {}]   ;;  %s154_s1 = inlined_call_operand.hbm [shape: f32[8,32], index: 1, kind: input, shape index: {}]   ;;  %s155_s2 = inlined_call_operand.vmem [shape: f32[1,8], index: 2, kind: output, shape index: {}]  }
   0x1   :  { %8 = vsyncpa [#allocation5], 0  ;;  %s109_s9 = smov [#allocation2]   ;;  %s110_s11 = smov [#allocation4]  }
   0x2   :  { %s15_s10 = sshll.u32 %s109_s9, 4  ;;  %s25_s12 = sshll.u32 %s110_s11, 4  ;;  %s16_s10 = int_to_ptr.vmem [resolvable:$true] %s15_s10  ;;  %s26_s12 = int_to_ptr.vmem [resolvable:$true] %s25_s12 }
   0x3   :  { %s61_s15 = scalar_lea.hbm %s153_s0, 128 }
   0x4   :  { %p62_p0 = scmp.ne.s32.totalorder %s153_s0, %s61_s15  ;;  %p65_p1 = scmp.lt.u32.totalorder %s61_s15, %s153_s0 }
   0x6   :  { %p67_p2 = pnand %p65_p1, %p62_p0 }
   0x8   :  { %70 = shalt.err (!%p67_p2)
}
   0x9   :  { %s71_s20 = scalar_lea.vmem %s16_s10, 128  ;;  %p76_p4 = scmp.lt.s32.totalorder %s16_s10, %s16_s10 }
   0xa   :  { %p72_p3 = scmp.ne.s32.totalorder %s16_s10, %s71_s20  ;;  %p77_p5 = scmp.lt.s32.totalorder %s71_s20, %s71_s20 }
   0xc   :  { %p78_p6 = por %p77_p5, %p76_p4 }
   0xe   :  { %p79_p7 = pnand %p78_p6, %p72_p3 }
  0x10   :  { %82 = shalt.err (!%p79_p7)
}
  0x11   :  { %18 = dma.hbm_to_vmem [thread:$0]  %s153_s0, 128, %s16_s10, [#allocation3]  }
  0x12   :  { %s83_s25 = scalar_lea.hbm %s154_s1, 128 }
  0x13   :  { %p84_p8 = scmp.ne.s32.totalorder %s154_s1, %s83_s25  ;;  %p87_p9 = scmp.lt.u32.totalorder %s83_s25, %s154_s1 }
  0x15   :  { %p89_p10 = pnand %p87_p9, %p84_p8 }
  0x17   :  { %92 = shalt.err (!%p89_p10)
}
  0x18   :  { %s93_s30 = scalar_lea.vmem %s26_s12, 128  ;;  %p98_p12 = scmp.lt.s32.totalorder %s26_s12, %s26_s12 }
  0x19   :  { %p94_p11 = scmp.ne.s32.totalorder %s26_s12, %s93_s30  ;;  %p99_p13 = scmp.lt.s32.totalorder %s93_s30, %s93_s30 }
  0x1b   :  { %p100_p0 = por %p99_p13, %p98_p12 }
  0x1d   :  { %p101_p1 = pnand %p100_p0, %p94_p11 }
  0x1f   :  { %104 = shalt.err (!%p101_p1)
}
  0x20   :  { %28 = dma.hbm_to_vmem [thread:$0]  %s154_s1, 128, %s26_s12, [#allocation5]  }
  0x21   :  { %105 = dma.done.wait [#allocation3], 128  }
  0x22   :  { %106 = vsyncadd [#allocation3], 4294967168 }
  0x23   :  { %107 = dma.done.wait [#allocation5], 128  }
  0x24   :  { %108 = vsyncadd [#allocation5], 4294967168  ;;  %v35_v0 = vld [vmem:[#allocation2] sm:$0xff]  ;;  %v36_v1 = vld [vmem:[#allocation4] sm:$0xff]  ;;  %vm38_vm0 = vcmask 261120   ;;  %v44_v4 = vlaneseq  ;;  %vm51_vm1 = vcmask 57344  }
  0x25   :  { %v37_v2 = vmul.f32 %v36_v1, %v35_v0 }
  0x26   :  { %v45_v5 = vand.u32 127, %v44_v4  ;;  %v47_v6 = vshrl.u32 %v44_v4, 7 }
  0x27   :  { %v39_v3 = vsel %vm38_vm0, %v37_v2, 0.0 }
  0x28   :  { %40 = vadd.xlane.f32.xlu0 %v39_v3  ;;  %v48_v7 = vsub.s32 %v45_v5, %v47_v6 }
  0xb5   :  { %v41_v8 = vpop.xlane.xlu0 %40 }
  0xb6   :  { %v42_v9 = vmul.f32 0.03125, %v41_v8 }
  0xb8   :  { %v49_v10 = vrot.slane %v42_v9, %v48_v7 }
  0xba   :  { %52 = vst.msk [vmem:[%s155_s2] sm:$0x1] %vm51_vm1, %v49_v10 }
  0xbb   :  { %57 = vsyncpa [#allocation3], 1 }
  0xbc   :  { %58 = vsyncpa [#allocation5], 1 }

</bundles_post_ra>
